<compile_context>
chip_gen: v6e
topology: v6e:2x2x1
jax: 0.10.0
libtpu: 0.0.40
codegen_flags: <defaults>
</compile_context>

<pallas_src>
import jax
import jax.numpy as jnp
from jax.experimental import pallas as pl
from jax.experimental.pallas import tpu as pltpu


def _class_head_kernel(x_ref, w_ref, b_ref, o_ref):
    # x_ref: (1, C_in, t_hw)   w_ref: (C_out, C_in)   b_ref: (C_out, 1) f32
    # o_ref: (1, C_out, t_hw)  -- spatial axis lane-dense on input and output
    acc = jnp.dot(w_ref[...], x_ref[0], preferred_element_type=jnp.float32)
    o_ref[0] = (acc + b_ref[...]).astype(o_ref.dtype)


def _pallas_conv1x1(x_ncl, w_mat, b_mat, *, t_hw, triple_buffer):
    N, C_in, HW = x_ncl.shape
    C_out = w_mat.shape[0]

    x_map = lambda n, j: (n, 0, j)
    if triple_buffer:
        # Third buffer on the big input stream: compute per step is near-zero, so
        # throughput is back-to-back DMA; only x needs it (weight/bias are resident).
        x_spec = pl.BlockSpec((1, C_in, t_hw), x_map, pipeline_mode=pl.Buffered(3))
    else:
        x_spec = pl.BlockSpec((1, C_in, t_hw), x_map)

    flops = 2 * N * C_out * C_in * HW
    bytes_accessed = (N * C_in * HW * x_ncl.dtype.itemsize
                      + C_out * C_in * w_mat.dtype.itemsize
                      + N * C_out * HW * x_ncl.dtype.itemsize
                      + C_out * b_mat.dtype.itemsize)

    return pl.pallas_call(
        _class_head_kernel,
        out_shape=jax.ShapeDtypeStruct((N, C_out, HW), x_ncl.dtype),
        grid_spec=pltpu.PrefetchScalarGridSpec(
            num_scalar_prefetch=0,
            grid=(N, pl.cdiv(HW, t_hw)),          # ragged last block is clipped
            in_specs=[
                x_spec,
                pl.BlockSpec((C_out, C_in), lambda n, j: (0, 0)),
                pl.BlockSpec((C_out, 1), lambda n, j: (0, 0)),
            ],
            out_specs=pl.BlockSpec((1, C_out, t_hw), lambda n, j: (n, 0, j)),
        ),
        compiler_params=pltpu.CompilerParams(
            dimension_semantics=("parallel", "parallel")),
        cost_estimate=pl.CostEstimate(
            flops=flops, transcendentals=0, bytes_accessed=bytes_accessed),
    )(x_ncl, w_mat, b_mat)


def class_head_forward(x_nchw, weight, bias, num_anchors, *, t_hw_max=4096):
    """x_nchw: (N, C_in, H, W); weight: (C_out, C_in) (1x1 conv kernel squeezed);
    bias: (C_out,).  Returns (N, H*W*num_anchors, 2) in x's dtype."""
    N, C_in, H, W = x_nchw.shape
    C_out = num_anchors * 2
    assert weight.shape == (C_out, C_in)
    HW = H * W

    # Native NCHW layout: (N, C_in, H*W). No transpose / pad of the big activation.
    x_ncl = x_nchw.reshape(N, C_in, HW)

    # --- spatial tile selection -------------------------------------------------
    # Budget ~12 MiB for up to 3 x-buffers so v5e's 16 MiB default scoped VMEM is
    # safe; on v6e/v7x raise t_hw_max (and vmem_limit_bytes) for bigger tiles.
    itemsize = jnp.dtype(x_nchw.dtype).itemsize
    vmem_budget = 12 * 1024 * 1024
    cols_by_vmem = max(128, vmem_budget // (3 * C_in * itemsize))
    t_hw_max = max(128, min(t_hw_max, (cols_by_vmem // 128) * 128))

    if HW <= t_hw_max:
        if N == 1 and HW >= 256:
            # Keep >=2 parallel grid steps so both v7x TensorCores get work.
            t_hw = pl.cdiv(pl.cdiv(HW, 2), 128) * 128
        else:
            t_hw = HW            # full spatial extent in one block (valid block shape)
    else:
        t_hw = t_hw_max          # multiple of 128; last grid step may be a partial block

    w_mat = weight                                        # (C_out, C_in), streamed as-is
    b_mat = bias.astype(jnp.float32).reshape(C_out, 1)    # f32 bias, added before cast

    try:
        out_ncl = _pallas_conv1x1(x_ncl, w_mat, b_mat, t_hw=t_hw, triple_buffer=True)
    except Exception:
        # pl.Buffered / pipeline_mode unavailable on this jax+libtpu combo:
        # fall back to the default double-buffered pipeline.
        out_ncl = _pallas_conv1x1(x_ncl, w_mat, b_mat, t_hw=t_hw, triple_buffer=False)

    # Tiny epilogue: channels-last permute of (N, C_out, HW), then view as (N, HW*A, 2).
    out_nlc = jnp.transpose(out_ncl, (0, 2, 1))           # (N, HW, C_out)
    return out_nlc.reshape(N, HW * num_anchors, 2)


if __name__ == "__main__":
    # Small shapes consistent with the module (in_dim shrunk from 512 for the demo).
    N, C_in, H, W = 2, 32, 16, 16
    num_anchors = 3
    C_out = num_anchors * 2

    key = jax.random.PRNGKey(0)
    kx, kw, kb = jax.random.split(key, 3)
    # Activation and 1x1-conv weight streamed in bf16 (memory-bound op); bias f32.
    x = jax.random.normal(kx, (N, C_in, H, W), dtype=jnp.float32).astype(jnp.bfloat16)
    weight = (jax.random.normal(kw, (C_out, C_in), dtype=jnp.float32) * 0.05
              ).astype(jnp.bfloat16)
    bias = jax.random.normal(kb, (C_out,), dtype=jnp.float32) * 0.05

    out = class_head_forward(x, weight, bias, num_anchors)
    out = jax.block_until_ready(out)

    # Reference (plain JAX): f32 math on the same bf16-rounded inputs.
    xf = x.astype(jnp.float32)
    wf = weight.astype(jnp.float32)
    ref = jnp.einsum("nchw,oc->nhwo", xf, wf) + bias
    ref = ref.reshape(N, H * W * num_anchors, 2)

    assert out.shape == (N, H * W * num_anchors, 2)
    assert out.dtype == x.dtype
    # bf16 streaming + bf16 output with f32 accumulation: loosened tolerance.
    assert jnp.allclose(out.astype(jnp.float32), ref, atol=2e-2, rtol=2e-2)

    print("KERNEL_OK")
</pallas_src>

<mosaic_0001>
module attributes {stable_mosaic.version = 11 : i64} {
  func.func @_class_head_kernel(%arg0: i32, %arg1: i32, %arg2: memref<1x32x256xbf16, #tpu.memory_space<vmem>>, %arg3: memref<6x32xbf16, #tpu.memory_space<vmem>>, %arg4: memref<6x1xf32, #tpu.memory_space<vmem>>, %arg5: memref<1x6x256xbf16, #tpu.memory_space<vmem>>) attributes {dimension_semantics = [#tpu.dimension_semantics<parallel>, #tpu.dimension_semantics<parallel>], iteration_bounds = array<i64: 2, 1>, scalar_prefetch = 0 : i64, scratch_operands = 0 : i64, tpu.core_type = #tpu.core_type<tc>, window_params = [{transform_indices = @transform_0, window_bounds = array<i64: 1, 32, 256>}, {pipeline_mode = #tpu.pipeline_mode<synchronous>, transform_indices = @transform_1, window_bounds = array<i64: 6, 32>}, {pipeline_mode = #tpu.pipeline_mode<synchronous>, transform_indices = @transform_2, window_bounds = array<i64: 6, 1>}, {transform_indices = @transform_3, window_bounds = array<i64: 1, 6, 256>}]} {
    %c0 = arith.constant 0 : index
    %c0_0 = arith.constant 0 : index
    %0 = vector.load %arg3[%c0, %c0_0] : memref<6x32xbf16, #tpu.memory_space<vmem>>, vector<6x32xbf16>
    %c0_1 = arith.constant 0 : index
    %c0_2 = arith.constant 0 : index
    %c0_3 = arith.constant 0 : index
    %1 = vector.load %arg2[%c0_1, %c0_2, %c0_3] : memref<1x32x256xbf16, #tpu.memory_space<vmem>>, vector<1x32x256xbf16>
    %2 = vector.shape_cast %1 : vector<1x32x256xbf16> to vector<32x256xbf16>
    %cst = arith.constant dense<0.000000e+00> : vector<6x256xf32>
    %3 = tpu.matmul %0, %2, %cst {dimension_numbers = #tpu.dot_dimension_numbers<[1], [0], [0], [1], [0, 0, 1, 1], [], []>} : vector<6x32xbf16>, vector<32x256xbf16>, vector<6x256xf32> -> vector<6x256xf32>
    %c0_4 = arith.constant 0 : index
    %c0_5 = arith.constant 0 : index
    %4 = vector.load %arg4[%c0_4, %c0_5] : memref<6x1xf32, #tpu.memory_space<vmem>>, vector<6x1xf32>
    %5 = vector.broadcast %4 : vector<6x1xf32> to vector<6x256xf32>
    %6 = arith.addf %3, %5 : vector<6x256xf32>
    %7 = arith.truncf %6 : vector<6x256xf32> to vector<6x256xbf16>
    %c0_6 = arith.constant 0 : index
    %c0_7 = arith.constant 0 : index
    %c0_8 = arith.constant 0 : index
    %8 = vector.load %arg5[%c0_6, %c0_7, %c0_8] : memref<1x6x256xbf16, #tpu.memory_space<vmem>>, vector<1x6x256xbf16>
    %9 = vector.shape_cast %8 : vector<1x6x256xbf16> to vector<6x256xbf16>
    %10 = vector.shape_cast %7 : vector<6x256xbf16> to vector<1x6x256xbf16>
    tpu.vector_store %arg5[%c0_6, %c0_7, %c0_8], %10 {strides = array<i32>} : memref<1x6x256xbf16, #tpu.memory_space<vmem>>, vector<1x6x256xbf16>,
    return
  }
  func.func @transform_0(%arg0: i32, %arg1: i32) -> (i32, i32, i32) {
    %c0_i32 = arith.constant 0 : i32
    %c0_i32_0 = arith.constant 0 : i32
    return %arg0, %c0_i32, %arg1 : i32, i32, i32
  }
  func.func @transform_1(%arg0: i32, %arg1: i32) -> (i32, i32) {
    %c0_i32 = arith.constant 0 : i32
    %c0_i32_0 = arith.constant 0 : i32
    %c0_i32_1 = arith.constant 0 : i32
    return %c0_i32, %c0_i32_0 : i32, i32
  }
  func.func @transform_2(%arg0: i32, %arg1: i32) -> (i32, i32) {
    %c0_i32 = arith.constant 0 : i32
    %c0_i32_0 = arith.constant 0 : i32
    %c0_i32_1 = arith.constant 0 : i32
    return %c0_i32, %c0_i32_0 : i32, i32
  }
  func.func @transform_3(%arg0: i32, %arg1: i32) -> (i32, i32, i32) {
    %c0_i32 = arith.constant 0 : i32
    %c0_i32_0 = arith.constant 0 : i32
    return %arg0, %c0_i32, %arg1 : i32, i32, i32
  }
}

</mosaic_0001>

<bundles_post_ra>
// kernel: tpu_custom_call.1
= control target key start
LH: loop header
LB: loop body
LE: loop exit
PB: predicated region body
PF: predicated region fallthrough
CT: control target
= control target key end

     0   :  { %8 = vsyncpa [#allocation3], 0  ;;  %s693_s0 = inlined_call_operand.hbm [shape: bf16[2,32,256], index: 0, kind: input, shape index: {}]   ;;  %s694_s1 = inlined_call_operand.vmem [shape: bf16[6,32], index: 1, kind: input, shape index: {}]   ;;  %s695_s2 = inlined_call_operand.vmem [shape: f32[6,1], index: 2, kind: input, shape index: {}]   ;;  %s696_s3 = inlined_call_operand.vmem [shape: bf16[2,6,256], index: 3, kind: output, shape index: {}]  }
   0x1   :  { %10 = vsyncpa [#allocation3 + $0x1], 0  ;;  %s591_s12 = smov 0   ;;  %s593_s13 = smov 0  }
   0x2   :  { %s595_s14 = smov 0   ;;  %s597_s15 = smov 0  }
   0x3   :  { %s599_s16 = smov 0   ;;  %s601_s17 = smov 0  }
   0x4 LB: > { %s400_s18 = sadd.s32 4294967295, %s565_s17   ;;  %s28_s19 = sadd.s32 1, %s561_s16  ;;  %s565_s17 = sphi %s601_s17, %s16_s17   ;;  %s561_s16 = sphi %s599_s16, %s704_s16   ;;  %s557_s15 = sphi %s597_s15, %s703_s15   ;;  %s553_s14 = sphi %s595_s14, %s702_s14   ;;  %s549_s13 = sphi %s593_s13, %s701_s13   ;;  %s545_s12 = sphi %s591_s12, %s700_s12  }
   0x5   : > { %p30_p0 = scmp.ge.s32.totalorder %s28_s19, 2  ;;  %s37_s20 = sadd.s32 1, %s553_s14 }
   0x6   : > { %p44_p1 = scmp.ne.s32.totalorder %s553_s14, %s549_s13  ;;  %p45_p2 = scmp.eq.s32.totalorder %s565_s17, 0 }
   0x7   : > { %s706_s19 = smov (%p30_p0, %s28_s19), 0  ;;  %p50_p4 = scmp.ne.s32.totalorder %s549_s13, %s545_s12 }
   0x8   : > { %p627_p3 = por %p45_p2, %p44_p1  ;;  %s32_s22 = ssub.s32 %s561_s16, %s706_s19 }
   0x9   : > { %p51_p5 = scmp.eq.s32.totalorder %s400_s18, 0  ;;  %p35_p6 = scmp.eq.s32.totalorder %s32_s22, 0 }
   0xa   : > { %p428_p8 = scmp.lt.s32.totalorder %s565_s17, 2  ;;  %s150_s25 = sand.u32 1, %s553_s14  }
   0xb   : > { %p634_p7 = por %p51_p5, %p50_p4  ;;  %s419_s26 = sshll.u32 %s561_s16, 9 }
   0xc   : > { %s640_s24 = scalar_select %p35_p6, %s553_s14, %s37_s20  }
   0xd   : > { %s404_s27 = sshll.u32 %s150_s25, 5  ;;  %s162_s30 = scalar_lea.hbm %s693_s0, %s419_s26 }
   0xe   : > { %s154_s4 = scalar_lea.vmem [#allocation2], %s404_s27  ;;  %p649_p9 = pnand %p428_p8, %p627_p3 }
   0xf   : > { %s163_s5 = sshll.u32 %s154_s4, 4  ;;  %s151_s7 = scalar_lea.sflag [#allocation3], %s150_s25  ;;  %s164_s5 = int_to_ptr.vmem [resolvable:$true] %s163_s5 }
  0x10   : > { %p489_p10 = pneg %p649_p9  ;;  %s500_s8 = scalar_lea.vmem %s164_s5, 512 }
  0x11   : > { %p501_p11 = scmp.ne.s32.totalorder %s164_s5, %s500_s8  ;;  %s567_s9 = smov [#allocation2]  }
  0x12   : > { %s505_s10 = sshll.u32 %s567_s9, 4  ;;  %s506_s10 = int_to_ptr.vmem [resolvable:$false] %s505_s10 }
  0x13   : > { %p503_p12 = pnand %p501_p11, %p489_p10  ;;  %s507_s11 = scalar_lea.vmem %s506_s10, 1024 }
  0x14   : > { %p508_p0 = scmp.lt.s32.totalorder %s164_s5, %s506_s10  ;;  %p509_p1 = scmp.lt.s32.totalorder %s507_s11, %s500_s8 }
  0x15   : > { %p504_p13 = pneg %p503_p12 }
  0x16   : > { %p510_p2 = por %p509_p1, %p508_p0 }
  0x18   : > { %p511_p3 = pnand %p510_p2, %p504_p13 }
  0x1a   : > { %514 = shalt.err (!%p511_p3)
}
  0x1b   : > { %s568_s12 = smov 128   ;;  %s569_s18 = smov 8  }
  0x1c   : > { %427 = dma.hbm_to_vmem [thread:$0]  (!%p649_p9), %s162_s30, 512, %s164_s5, %s151_s7, %s568_s12, %s568_s12, %s569_s18  }
  0x1d   : > { %p407_p4 = scmp.ge.s32.totalorder %s565_s17, 1  ;;  %p171_p5 = scmp.lt.s32.totalorder %s565_s17, 3 }
  0x1f   : > { %p172_p6 = pnand %p407_p4, %p171_p5 }
  0x20   : > { %s177_s20 = sand.u32 (!%p172_p6), 1, %s549_s13  }
  0x21   : > { %175 = sbr.rel (%p172_p6) target bundleno = 249 (0xf9), region = 32  ;;  %s408_s21 = sshll.u32 (!%p172_p6), %s177_s20, 5 }
  0x22   : > { %s178_s22 = scalar_lea.sflag (!%p172_p6), [#allocation3], %s177_s20  ;;  %s181_s25 = scalar_lea.vmem (!%p172_p6), [#allocation2], %s408_s21 }
  0x26   : > { %540 = dma.done.wait (%p634_p7), %s178_s22, 512  }
  0x27   : > { %542 = vsyncadd (%p634_p7), %s178_s22, 4294966784  ;;  %v570_v0 = vmov 0   ;;  %v481_v1 = vld [vmem:[%s181_s25 + $0x14] ss:$8 sps:$4 sm:$0xff]   ;;  %v483_v2 = vld [vmem:[%s181_s25 + $0x10] ss:$8 sps:$4 sm:$0xff]  }
  0x28   : > { %287 = vmatprep.mubr.bf16.mxu0 %v570_v0  ;;  %480 = vset.pattern.permute.xlu0 %v570_v0  ;;  %v484_v3 = vld [vmem:[%s181_s25 + $0x4] ss:$8 sps:$4 sm:$0xff]   ;;  %v486_v4 = vld [vmem:[%s181_s25] ss:$8 sps:$4 sm:$0xff]   ;;  %vm251_vm0 = vcmask 261120   ;;  %p210_p7 = scmp.lt.s32.totalorder %s557_s15, 1 }
  0x29   : > { %267 = vmatprep.subr.bf16.mxu0 %v481_v1  ;;  %v225_v5 = vld [vmem:[%s695_s2] sm:$0x3f] }
  0x2a   : > { %268 = vmatpush1.bf16.msra.mxu0 %v483_v2  ;;  %228 = vperm.xlu0 %480, %v225_v5   ;;  %v220_v6 = vld [vmem:[%s694_s1] sm:$0x7]  ;;  %s708_s15 = smov (!%p210_p7, %s557_s15), 1 }
  0x2b   : > { %269 = vmatprep.subr.bf16.mxu0 %v484_v3  ;;  %s420_s29 = sshll.u32 %s708_s15, 3 }
  0x2c   : > { %s217_s5 = scalar_lea.vmem %s696_s3, %s420_s29 }
  0x2e   : > { %270 = vmatpush1.bf16.msra.mxu0 %v486_v4 }
  0x31   : > { %415 = vmatmul.mubr.msk.bf16.vlgmr.msra.gmra.mxu0 %vm251_vm0, %v220_v6 }
  0xa5   : > { %v229_v7 = vpop.permute.xlu0 %228 }
  0xf1   : > { %v289_v8 = vpop.f32.mrf.mxu0 }
  0xf2   : > { %v290_v10 = vadd.f32 %v289_v8, %v229_v7 }
  0xf3   : > { %v291_v9 = vpop.f32.mrf.mxu0 }
  0xf4   : > { %v292_v11 = vadd.f32 %v291_v9, %v229_v7 }
  0xf5   : > { %v293_v12 = vpop.f32.mrf.mxu0 }
  0xf6   : > { %v421_v13 = vpack.c.bf16 %v292_v11, %v290_v10 }
  0xf7   : > { %v294_v14 = vpop.f32.mrf.mxu0 }
  0xf8   : > { %304 = vst [vmem:[%s217_s5] sm:$0x77] %v421_v13 }
  0xf9 PF: > { %s16_s17 = sadd.s32 1, %s565_s17   ;;  %s700_s12 = smov %s549_s13 }
  0xfa   : > { %p13_p8 = scmp.ge.s32.totalorder %s16_s17, 4   ;;  %s701_s13 = smov %s553_s14 }
  0xfb   : > { %s702_s14 = smov %s640_s24  ;;  %s703_s15 = smov %s561_s16 }
  0xfc   : > { %s704_s16 = smov %s706_s19  ;;  %15 = sbr.rel (!%p13_p8) target bundleno = 4 (0x4), region = 72 }
 0x101   :  { %335 = vsyncpa [#allocation3], 1 }
 0x102   :  { %337 = vsyncpa [#allocation3 + $0x1], 1 }

</bundles_post_ra>
